<compile_context>
chip_gen: v6e
topology: v6e:2x2x1
jax: 0.10.0
libtpu: 0.0.40
codegen_flags: <defaults>
</compile_context>

<pallas_src>
import jax
import jax.numpy as jnp
from jax.experimental import pallas as pl
from jax.experimental.pallas import tpu as pltpu

_SUBLANE = 8  # vreg sublane width (second-to-last dim)


def _round_up(x: int, m: int) -> int:
    return ((x + m - 1) // m) * m


def td3_actor_kernel(x_ref, w1_ref, b1_ref, w2_ref, b2_ref, w3_ref, b3_ref,
                     out_ref):
    """Fused 3-layer MLP: relu(relu(x@W1+b1)@W2+b2)@W3+b3 on one batch tile.

    Matmuls run on the MXU in the weight dtype (bf16) with f32 accumulation;
    bias adds / ReLU are f32 VPU work (free filler next to the MXU pushes).
    """
    x = x_ref[...]  # bf16 batch tile, fed straight to the MXU

    # Layer 1: Linear + ReLU
    h = jnp.dot(x, w1_ref[...], preferred_element_type=jnp.float32)
    h = jnp.maximum(h + b1_ref[...], 0.0)

    # Layer 2: Linear + ReLU
    h = jnp.dot(h.astype(w2_ref.dtype), w2_ref[...],
                preferred_element_type=jnp.float32)
    h = jnp.maximum(h + b2_ref[...], 0.0)

    # Layer 3: Linear (raw output; forward() has no tanh)
    y = jnp.dot(h.astype(w3_ref.dtype), w3_ref[...],
                preferred_element_type=jnp.float32)
    out_ref[...] = (y + b3_ref[...]).astype(out_ref.dtype)


def td3_actor_forward(state, w1, b1, w2, b2, w3, b3, *, block_batch=1024,
                      out_dtype=jnp.float32):
    """Fused TD3 actor MLP.

    state: (B, state_dim); weights stored transposed vs. PyTorch as
    (fan_in, fan_out) bf16; biases as (1, fan_out) f32.
    Returns (B, action_dim) `out_dtype` (f32 default).
    """
    batch, state_dim = state.shape
    hidden = w1.shape[1]
    action_dim = w3.shape[1]

    # Guarantee the bf16 MXU path even if the caller hands us f32 state.
    state = state.astype(w1.dtype)

    # Batch padding: sublane alignment only (<= 7 wasted rows); feature dims
    # are left at their natural sizes (block == full array dim is legal).
    b_pad = _round_up(batch, _SUBLANE)
    if b_pad != batch:
        state = jnp.pad(state, ((0, b_pad - batch), (0, 0)))

    # Batch tile: big (step-overhead amortization), 8-aligned; a partial tail
    # block is handled by the grid via cdiv instead of rounding batch up to tb.
    tb = min(block_batch, b_pad)
    grid = (pl.cdiv(b_pad, tb),)

    # Weights/biases: same block every grid step -> stay VMEM-resident.
    # TODO(synk): for very large hidden on v5e/v7x, pass
    # pipeline_mode=pl.Buffered(1) here (and set vmem_limit_bytes) to avoid
    # double-buffering the pinned weights.
    def pinned(shape):
        return pl.BlockSpec(shape, lambda i: (0, 0))

    out = pl.pallas_call(
        td3_actor_kernel,
        out_shape=jax.ShapeDtypeStruct((b_pad, action_dim), out_dtype),
        grid=grid,
        in_specs=[
            pl.BlockSpec((tb, state_dim), lambda i: (i, 0)),   # streamed state
            pinned((state_dim, hidden)), pinned((1, hidden)),  # W1, b1
            pinned((hidden, hidden)), pinned((1, hidden)),     # W2, b2
            pinned((hidden, action_dim)), pinned((1, action_dim)),  # W3, b3
        ],
        out_specs=pl.BlockSpec((tb, action_dim), lambda i: (i, 0)),
        compiler_params=pltpu.CompilerParams(
            dimension_semantics=("parallel",),  # batch axis is independent
        ),
    )(state, w1, b1, w2, b2, w3, b3)

    if b_pad != batch:
        out = out[:batch]
    return out


def init_params(key, state_dim, action_dim, hidden_size,
                weight_dtype=jnp.bfloat16):
    """PyTorch-Linear-style init (U[-1/sqrt(fan_in), +]), weights transposed.

    Weights in bf16 (MXU-native), biases kept in f32 (added to the f32
    accumulator).
    """
    keys = jax.random.split(key, 6)

    def linear(kw, kb, fan_in, fan_out):
        bound = 1.0 / jnp.sqrt(jnp.float32(fan_in))
        w = jax.random.uniform(kw, (fan_in, fan_out), jnp.float32, -bound, bound)
        b = jax.random.uniform(kb, (1, fan_out), jnp.float32, -bound, bound)
        return w.astype(weight_dtype), b

    w1, b1 = linear(keys[0], keys[1], state_dim, hidden_size)
    w2, b2 = linear(keys[2], keys[3], hidden_size, hidden_size)
    w3, b3 = linear(keys[4], keys[5], hidden_size, action_dim)
    return w1, b1, w2, b2, w3, b3


if __name__ == "__main__":
    batch = 2
    state_dim = 8
    action_dim = 4
    hidden_size = 32

    key = jax.random.PRNGKey(0)
    k_state, k_params = jax.random.split(key)

    state = jax.random.normal(k_state, (batch, state_dim), jnp.float32)
    params = init_params(k_params, state_dim, action_dim, hidden_size)

    out = td3_actor_forward(state, *params)
    out = jax.block_until_ready(out)

    # Reference in plain JAX mirroring the kernel's numerics (bf16 weights /
    # activations between layers, f32 accumulation).  Differences vs. an f32
    # PyTorch forward are at bf16 precision, hence the 3e-2 tolerance.
    w1, b1, w2, b2, w3, b3 = params
    xs = state.astype(jnp.bfloat16).astype(jnp.float32)
    h1 = jnp.maximum(xs @ w1.astype(jnp.float32) + b1, 0.0)
    h1 = h1.astype(jnp.bfloat16).astype(jnp.float32)
    h2 = jnp.maximum(h1 @ w2.astype(jnp.float32) + b2, 0.0)
    h2 = h2.astype(jnp.bfloat16).astype(jnp.float32)
    ref = h2 @ w3.astype(jnp.float32) + b3

    assert out.shape == (batch, action_dim)
    assert out.dtype == jnp.float32
    assert jnp.allclose(out, ref, atol=3e-2, rtol=3e-2), (
        f"max abs err {jnp.max(jnp.abs(out - ref))}")

    print("KERNEL_OK")
</pallas_src>

<mosaic_0001>
module attributes {stable_mosaic.version = 11 : i64} {
  func.func @td3_actor_kernel(%arg0: i32, %arg1: memref<8x8xbf16, #tpu.memory_space<vmem>>, %arg2: memref<8x32xbf16, #tpu.memory_space<vmem>>, %arg3: memref<1x32xf32, #tpu.memory_space<vmem>>, %arg4: memref<32x32xbf16, #tpu.memory_space<vmem>>, %arg5: memref<1x32xf32, #tpu.memory_space<vmem>>, %arg6: memref<32x4xbf16, #tpu.memory_space<vmem>>, %arg7: memref<1x4xf32, #tpu.memory_space<vmem>>, %arg8: memref<8x4xf32, #tpu.memory_space<vmem>>) attributes {dimension_semantics = [#tpu.dimension_semantics<parallel>], iteration_bounds = array<i64: 1>, scalar_prefetch = 0 : i64, scratch_operands = 0 : i64, tpu.core_type = #tpu.core_type<tc>, window_params = [{transform_indices = @transform_0, window_bounds = array<i64: 8, 8>}, {pipeline_mode = #tpu.pipeline_mode<synchronous>, transform_indices = @transform_1, window_bounds = array<i64: 8, 32>}, {pipeline_mode = #tpu.pipeline_mode<synchronous>, transform_indices = @transform_2, window_bounds = array<i64: 1, 32>}, {pipeline_mode = #tpu.pipeline_mode<synchronous>, transform_indices = @transform_3, window_bounds = array<i64: 32, 32>}, {pipeline_mode = #tpu.pipeline_mode<synchronous>, transform_indices = @transform_4, window_bounds = array<i64: 1, 32>}, {pipeline_mode = #tpu.pipeline_mode<synchronous>, transform_indices = @transform_5, window_bounds = array<i64: 32, 4>}, {pipeline_mode = #tpu.pipeline_mode<synchronous>, transform_indices = @transform_6, window_bounds = array<i64: 1, 4>}, {transform_indices = @transform_7, window_bounds = array<i64: 8, 4>}]} {
    %c0 = arith.constant 0 : index
    %c0_0 = arith.constant 0 : index
    %0 = vector.load %arg1[%c0, %c0_0] : memref<8x8xbf16, #tpu.memory_space<vmem>>, vector<8x8xbf16>
    %c0_1 = arith.constant 0 : index
    %c0_2 = arith.constant 0 : index
    %1 = vector.load %arg2[%c0_1, %c0_2] : memref<8x32xbf16, #tpu.memory_space<vmem>>, vector<8x32xbf16>
    %cst = arith.constant dense<0.000000e+00> : vector<8x32xf32>
    %2 = tpu.matmul %0, %1, %cst {dimension_numbers = #tpu.dot_dimension_numbers<[1], [0], [0], [1], [0, 0, 1, 1], [], []>} : vector<8x8xbf16>, vector<8x32xbf16>, vector<8x32xf32> -> vector<8x32xf32>
    %c0_3 = arith.constant 0 : index
    %c0_4 = arith.constant 0 : index
    %3 = vector.load %arg3[%c0_3, %c0_4] : memref<1x32xf32, #tpu.memory_space<vmem>>, vector<1x32xf32>
    %4 = vector.broadcast %3 : vector<1x32xf32> to vector<8x32xf32>
    %5 = arith.addf %2, %4 : vector<8x32xf32>
    %cst_5 = arith.constant 0.000000e+00 : f32
    %6 = vector.broadcast %cst_5 : f32 to vector<8x32xf32>
    %7 = arith.maximumf %5, %6 : vector<8x32xf32>
    %8 = arith.truncf %7 : vector<8x32xf32> to vector<8x32xbf16>
    %c0_6 = arith.constant 0 : index
    %c0_7 = arith.constant 0 : index
    %9 = vector.load %arg4[%c0_6, %c0_7] : memref<32x32xbf16, #tpu.memory_space<vmem>>, vector<32x32xbf16>
    %cst_8 = arith.constant dense<0.000000e+00> : vector<8x32xf32>
    %10 = tpu.matmul %8, %9, %cst_8 {dimension_numbers = #tpu.dot_dimension_numbers<[1], [0], [0], [1], [0, 0, 1, 1], [], []>} : vector<8x32xbf16>, vector<32x32xbf16>, vector<8x32xf32> -> vector<8x32xf32>
    %c0_9 = arith.constant 0 : index
    %c0_10 = arith.constant 0 : index
    %11 = vector.load %arg5[%c0_9, %c0_10] : memref<1x32xf32, #tpu.memory_space<vmem>>, vector<1x32xf32>
    %12 = vector.broadcast %11 : vector<1x32xf32> to vector<8x32xf32>
    %13 = arith.addf %10, %12 : vector<8x32xf32>
    %cst_11 = arith.constant 0.000000e+00 : f32
    %14 = vector.broadcast %cst_11 : f32 to vector<8x32xf32>
    %15 = arith.maximumf %13, %14 : vector<8x32xf32>
    %16 = arith.truncf %15 : vector<8x32xf32> to vector<8x32xbf16>
    %c0_12 = arith.constant 0 : index
    %c0_13 = arith.constant 0 : index
    %17 = vector.load %arg6[%c0_12, %c0_13] : memref<32x4xbf16, #tpu.memory_space<vmem>>, vector<32x4xbf16>
    %cst_14 = arith.constant dense<0.000000e+00> : vector<8x4xf32>
    %18 = tpu.matmul %16, %17, %cst_14 {dimension_numbers = #tpu.dot_dimension_numbers<[1], [0], [0], [1], [0, 0, 1, 1], [], []>} : vector<8x32xbf16>, vector<32x4xbf16>, vector<8x4xf32> -> vector<8x4xf32>
    %c0_15 = arith.constant 0 : index
    %c0_16 = arith.constant 0 : index
    %19 = vector.load %arg7[%c0_15, %c0_16] : memref<1x4xf32, #tpu.memory_space<vmem>>, vector<1x4xf32>
    %20 = vector.broadcast %19 : vector<1x4xf32> to vector<8x4xf32>
    %21 = arith.addf %18, %20 : vector<8x4xf32>
    %c0_17 = arith.constant 0 : index
    %c0_18 = arith.constant 0 : index
    %22 = vector.load %arg8[%c0_17, %c0_18] : memref<8x4xf32, #tpu.memory_space<vmem>>, vector<8x4xf32>
    tpu.vector_store %arg8[%c0_17, %c0_18], %21 {strides = array<i32>} : memref<8x4xf32, #tpu.memory_space<vmem>>, vector<8x4xf32>,
    return
  }
  func.func @transform_0(%arg0: i32) -> (i32, i32) {
    %c0_i32 = arith.constant 0 : i32
    %c0_i32_0 = arith.constant 0 : i32
    return %arg0, %c0_i32 : i32, i32
  }
  func.func @transform_1(%arg0: i32) -> (i32, i32) {
    %c0_i32 = arith.constant 0 : i32
    %c0_i32_0 = arith.constant 0 : i32
    %c0_i32_1 = arith.constant 0 : i32
    return %c0_i32, %c0_i32_0 : i32, i32
  }
  func.func @transform_2(%arg0: i32) -> (i32, i32) {
    %c0_i32 = arith.constant 0 : i32
    %c0_i32_0 = arith.constant 0 : i32
    %c0_i32_1 = arith.constant 0 : i32
    return %c0_i32, %c0_i32_0 : i32, i32
  }
  func.func @transform_3(%arg0: i32) -> (i32, i32) {
    %c0_i32 = arith.constant 0 : i32
    %c0_i32_0 = arith.constant 0 : i32
    %c0_i32_1 = arith.constant 0 : i32
    return %c0_i32, %c0_i32_0 : i32, i32
  }
  func.func @transform_4(%arg0: i32) -> (i32, i32) {
    %c0_i32 = arith.constant 0 : i32
    %c0_i32_0 = arith.constant 0 : i32
    %c0_i32_1 = arith.constant 0 : i32
    return %c0_i32, %c0_i32_0 : i32, i32
  }
  func.func @transform_5(%arg0: i32) -> (i32, i32) {
    %c0_i32 = arith.constant 0 : i32
    %c0_i32_0 = arith.constant 0 : i32
    %c0_i32_1 = arith.constant 0 : i32
    return %c0_i32, %c0_i32_0 : i32, i32
  }
  func.func @transform_6(%arg0: i32) -> (i32, i32) {
    %c0_i32 = arith.constant 0 : i32
    %c0_i32_0 = arith.constant 0 : i32
    %c0_i32_1 = arith.constant 0 : i32
    return %c0_i32, %c0_i32_0 : i32, i32
  }
  func.func @transform_7(%arg0: i32) -> (i32, i32) {
    %c0_i32 = arith.constant 0 : i32
    %c0_i32_0 = arith.constant 0 : i32
    return %arg0, %c0_i32 : i32, i32
  }
}

</mosaic_0001>

<bundles_post_ra>
// kernel: tpu_custom_call.1
= control target key start
LH: loop header
LB: loop body
LE: loop exit
PB: predicated region body
PF: predicated region fallthrough
CT: control target
= control target key end

     0   :  { %12 = vsyncpa [#allocation3], 0  ;;  %s309_s24 = smov [#allocation2]   ;;  %s382_s0 = inlined_call_operand.vmem [shape: bf16[8,8], index: 0, kind: input, shape index: {}]   ;;  %s383_s1 = inlined_call_operand.hbm [shape: bf16[8,32], index: 1, kind: input, shape index: {}]   ;;  %s384_s2 = inlined_call_operand.vmem [shape: f32[1,32], index: 2, kind: input, shape index: {}]   ;;  %s385_s3 = inlined_call_operand.vmem [shape: bf16[32,32], index: 3, kind: input, shape index: {}]   ;;  %s386_s4 = inlined_call_operand.vmem [shape: f32[1,32], index: 4, kind: input, shape index: {}]   ;;  %s387_s5 = inlined_call_operand.vmem [shape: bf16[32,4], index: 5, kind: input, shape index: {}]   ;;  %s388_s6 = inlined_call_operand.vmem [shape: f32[1,4], index: 6, kind: input, shape index: {}]   ;;  %s389_s7 = inlined_call_operand.vmem [shape: f32[8,4], index: 7, kind: output, shape index: {}]  }
   0x1   :  { %s21_s25 = sshll.u32 %s309_s24, 4  ;;  %s22_s25 = int_to_ptr.vmem [resolvable:$true] %s21_s25 }
   0x2   :  { %s295_s26 = scalar_lea.vmem %s22_s25, 64  ;;  %p300_p1 = scmp.lt.s32.totalorder %s22_s25, %s22_s25 }
   0x3   :  { %p296_p0 = scmp.ne.s32.totalorder %s22_s25, %s295_s26  ;;  %p301_p2 = scmp.lt.s32.totalorder %s295_s26, %s295_s26 }
   0x5   :  { %p302_p3 = por %p301_p2, %p300_p1 }
   0x7   :  { %p303_p4 = pnand %p302_p3, %p296_p0 }
   0x9   :  { %306 = shalt.err (!%p303_p4)
}
   0xa   :  { %24 = dma.hbm_to_vmem [thread:$0]  %s383_s1, 64, %s22_s25, [#allocation3]  }
   0xb   :  { %307 = dma.done.wait [#allocation3], 64  }
   0xc   :  { %308 = vsyncadd [#allocation3], 4294967232  ;;  %v310_v0 = vmov 0.0   ;;  %vm311_vm0 = vmmov 0   ;;  %vm52_vm1 = vcmask 1043456   ;;  %vm48_vm2 = vcmask 64512  }
   0xd   :  { %258 = vmatprep.subr.bf16.mxu0 %v310_v0  ;;  %260 = vmatprep.mubr.msk.bf16.mxu0 %vm311_vm0, %v310_v0  ;;  %v40_v1 = vld [vmem:[#allocation2] sm:$0xf]  ;;  %v283_v4 = vld [vmem:[%s385_s3 + $0x8] sm:$0xff]   ;;  %vm121_vm3 = vcmask 261120   ;;  %vm233_vm4 = vcmask 31744  }
   0xe   :  { %264 = vmatprep.subr.bf16.mxu1 %v310_v0  ;;  %268 = vmatprep.mubr.msk.bf16.mxu1 %vm311_vm0, %v310_v0  ;;  %v39_v2 = vld [vmem:[%s382_s0] sm:$0xf]  ;;  %v54_v3 = vsel %vm52_vm1, %v40_v1, 0  ;;  %v285_v6 = vld [vmem:[%s387_s5 + $0x8] sm:$0xff]  }
   0xf   :  { %259 = vmatpush3.bf16.msra.mxu0 %v54_v3  ;;  %265 = vmatpush3.bf16.msra.mxu1 %v283_v4  ;;  %v284_v5 = vld [vmem:[%s385_s3] sm:$0xff]  }
  0x10   :  { %272 = vmatprep.subr.bf16.mxu0 %v310_v0  ;;  %266 = vmatprep.subr.bf16.mxu1 %v310_v0  ;;  %v240_v7 = vld [vmem:[%s384_s2] ss:$0 sm:$0xff] }
  0x11   :  { %v286_v15 = vld [vmem:[%s387_s5] sm:$0xff]  }
  0x12   :  { %261 = vmatmul.mubr.msk.bf16.vlgmr.msra.gmra.mxu0 %vm48_vm2, %v39_v2  ;;  %v242_v16 = vld [vmem:[%s386_s4] ss:$0 sm:$0xff] }
  0x13   :  { %276 = vmatprep.mubr.msk.bf16.mxu0 %vm311_vm0, %v310_v0  ;;  %267 = vmatpush3.bf16.msra.mxu1 %v284_v5  ;;  %v246_v24 = vld [vmem:[%s388_s6] ss:$0 sm:$0xff] }
  0x14   :  { %273 = vmatpush3.bf16.msra.mxu0 %v285_v6 }
  0x15   :  { %274 = vmatprep.subr.bf16.mxu0 %v310_v0 }
  0x18   :  { %275 = vmatpush3.bf16.msra.mxu0 %v286_v15 }
  0xd2   :  { %v90_v8 = vpop.f32.mrf.mxu0 }
  0xd3   :  { %v91_v9 = vadd.f32 %v240_v7, %v90_v8 }
  0xd4   :  { %v262_v10 = vpop.f32.mrf.mxu0 }
  0xd5   :  { %v96_v11 = vmax.f32 %v91_v9, 0.0 }
  0xd6   :  { %v93_v12 = vpop.f32.mrf.mxu0 }
  0xd7   :  { %v97_v13 = vpack.c.bf16 %v96_v11, %v96_v11 }
  0xd8   :  { %v263_v14 = vpop.f32.mrf.mxu0 }
  0xd9   :  { %269 = vmatmul.mubr.msk.bf16.vlgmr.msra.gmra.mxu1 %vm121_vm3, %v97_v13 }
 0x199   :  { %v159_v17 = vpop.f32.mrf.mxu1 }
 0x19a   :  { %v160_v18 = vadd.f32 %v242_v16, %v159_v17 }
 0x19b   :  { %v270_v19 = vpop.f32.mrf.mxu1 }
 0x19c   :  { %v165_v20 = vmax.f32 %v160_v18, 0.0 }
 0x19d   :  { %v162_v21 = vpop.f32.mrf.mxu1 }
 0x19e   :  { %v166_v22 = vpack.c.bf16 %v165_v20, %v165_v20 }
 0x19f   :  { %v271_v23 = vpop.f32.mrf.mxu1 }
 0x1a0   :  { %277 = vmatmul.mubr.msk.bf16.vlgmr.msra.gmra.mxu0 %vm121_vm3, %v166_v22 }
 0x260   :  { %v227_v25 = vpop.f32.mrf.mxu0 }
 0x261   :  { %v228_v26 = vadd.f32 %v246_v24, %v227_v25 }
 0x262   :  { %v278_v27 = vpop.f32.mrf.mxu0 }
 0x263   :  { %234 = vst.msk [vmem:[%s389_s7] sm:$0xff] %vm233_vm4, %v228_v26 }
 0x264   :  { %v230_v28 = vpop.f32.mrf.mxu0 }
 0x266   :  { %v279_v29 = vpop.f32.mrf.mxu0 }
 0x267   :  { %239 = vsyncpa [#allocation3], 1 }

</bundles_post_ra>
